<compile_context>
chip_gen: v5e
topology: v5e:2x2
jax: 0.10.0
libtpu: 0.0.40
codegen_flags: <defaults>
</compile_context>

<pallas_src>
import functools

import jax
import jax.numpy as jnp
from jax.experimental import pallas as pl
from jax.experimental.pallas import tpu as pltpu


def _round_up(v, m):
    return (v + m - 1) // m * m


def _conv_kernel(x_ref, w_ref, b_ref, o_ref, slab_ref, col_ref, *,
                 k, p, Wp, H, W, Cin, Mpad, apply_relu):
    """Fused conv + bias + ReLU for one chunk of images.

    x_ref   : (chunk_n, Cin, H, W)  raw (unpadded) images
    w_ref   : (Cout, k*k*Cin)       fused weight matrix (tap-major, chan-minor)
    b_ref   : (Cout, 1)             f32 bias
    o_ref   : (chunk_n, Cout, Mpad) lane-dense dense-position output
    slab_ref: (Cin, Lspad)          zero-padded, H/W-flattened image slab
    col_ref : (k*k*Cin, Mpad)       in-VMEM im2col RHS
    """
    chunk_n = x_ref.shape[0]
    # Zero the slab once per grid step: the halo stays zero, the interior is
    # fully overwritten for every image in the chunk.
    slab_ref[...] = jnp.zeros_like(slab_ref)

    for n in range(chunk_n):
        img = x_ref[n]                                   # (Cin, H, W)
        # In-kernel zero padding: scatter raw rows into the slab interior.
        for h in range(H):
            slab_ref[:, pl.ds((p + h) * Wp + p, W)] = img[:, h, :]
        xflat = slab_ref[...]                            # (Cin, Lspad)

        # In-VMEM im2col: stack the k*k lane-shifted views -> (k*k*Cin, Mpad).
        for kh in range(k):
            for kw in range(k):
                t = kh * k + kw
                off = kh * Wp + kw                       # static shift
                col_ref[pl.ds(t * Cin, Cin), :] = xflat[:, off:off + Mpad]

        # Single fused MXU matmul: (Cout, k*k*Cin) @ (k*k*Cin, Mpad).
        acc = jnp.dot(w_ref[...], col_ref[...],
                      preferred_element_type=jnp.float32)
        acc = acc + b_ref[...]                           # f32 bias
        if apply_relu:
            acc = jnp.maximum(acc, 0.0)
        o_ref[n] = acc.astype(o_ref.dtype)


def basic_conv(x_nchw, weight, bias=None, *, stride=1, relu=True):
    """BasicConv forward: Conv2d(padding=k//2, stride) + bias + ReLU.

    x_nchw : (N, Cin, H, W)   weight : (Cout, Cin, k, k)   bias : (Cout,)
    returns  (N, Cout, Ho, Wo) -- same semantics as the PyTorch module.
    """
    N, Cin, H, W = x_nchw.shape
    Cout, Cin_w, k, k2 = weight.shape
    assert Cin_w == Cin and k2 == k
    s = int(stride)
    p = k // 2
    Ho = (H + 2 * p - k) // s + 1
    Wo = (W + 2 * p - k) // s + 1
    Hp, Wp = H + 2 * p, W + 2 * p
    Hd = Hp - k + 1                   # dense (stride-1) output rows
    M = Hd * Wp                       # dense output positions (incl. wrap cols)
    Mpad = _round_up(M, 128)          # full-width (128-lane) stores
    off_max = (k - 1) * Wp + (k - 1)
    Lspad = _round_up(max((Hp + k - 1) * Wp, off_max + Mpad), 128)
    K = k * k * Cin

    # weight (Cout, Cin, kh, kw) -> (Cout, kh, kw, Cin) -> (Cout, K), tap-major.
    w2 = jnp.transpose(weight, (0, 2, 3, 1)).reshape(Cout, K).astype(jnp.float32)
    if bias is None:
        bias = jnp.zeros((Cout,), jnp.float32)
    b2 = bias.reshape(Cout, 1).astype(jnp.float32)

    # Batch folding with (at most) two "parallel" chunks: both v7x TensorCores
    # stay busy; on v5e/v6e the grid is a cheap 1-2 step sequential loop.
    num_chunks = 2 if (N >= 2 and N % 2 == 0) else 1
    chunk_n = N // num_chunks

    kern = functools.partial(_conv_kernel, k=k, p=p, Wp=Wp, H=H, W=W, Cin=Cin,
                             Mpad=Mpad, apply_relu=relu)
    out = pl.pallas_call(
        kern,
        out_shape=jax.ShapeDtypeStruct((N, Cout, Mpad), x_nchw.dtype),
        grid=(num_chunks,),
        in_specs=[
            pl.BlockSpec((chunk_n, Cin, H, W), lambda i: (i, 0, 0, 0)),
            pl.BlockSpec((Cout, K), lambda i: (0, 0)),
            pl.BlockSpec((Cout, 1), lambda i: (0, 0)),
        ],
        out_specs=pl.BlockSpec((chunk_n, Cout, Mpad), lambda i: (i, 0, 0)),
        scratch_shapes=[
            pltpu.VMEM((Cin, Lspad), jnp.float32),   # zero-padded image slab
            pltpu.VMEM((K, Mpad), jnp.float32),      # in-VMEM im2col RHS
        ],
        compiler_params=pltpu.CompilerParams(
            dimension_semantics=("parallel",)),
    )(x_nchw.astype(jnp.float32), w2, b2)

    # Dense rows -> (Hd, Wp) grid; pick the strided valid positions.
    # Already NCHW (the kernel stored the transposed (Cout, Mpad) tile).
    out = out[:, :, :M].reshape(N, Cout, Hd, Wp)
    return out[:, :, 0:(Ho - 1) * s + 1:s, 0:(Wo - 1) * s + 1:s]


if __name__ == "__main__":
    # BasicConv(in_channel=4, out_channel=8, kernel_size=3, stride=1,
    #           bias=True, norm=False, relu=True, transpose=False)
    N, Cin, H, W = 2, 4, 16, 16
    Cout, k, stride = 8, 3, 1

    key = jax.random.PRNGKey(0)
    kx, kw_, kb = jax.random.split(key, 3)
    x = jax.random.normal(kx, (N, Cin, H, W), dtype=jnp.float32)
    weight = 0.1 * jax.random.normal(kw_, (Cout, Cin, k, k), dtype=jnp.float32)
    bias = 0.1 * jax.random.normal(kb, (Cout,), dtype=jnp.float32)

    # pure-JAX reference (matches PyTorch Conv2d + bias + ReLU semantics)
    p = k // 2
    ref = jax.lax.conv_general_dilated(
        x, weight, window_strides=(stride, stride),
        padding=[(p, p), (p, p)],
        dimension_numbers=("NCHW", "OIHW", "NCHW"),
        precision=jax.lax.Precision.HIGHEST)
    ref = jnp.maximum(ref + bias[None, :, None, None], 0.0)

    y = jax.block_until_ready(basic_conv(x, weight, bias, stride=stride, relu=True))
    assert y.shape == ref.shape == (N, Cout, H, W), (y.shape, ref.shape)
    assert jnp.allclose(y, ref, atol=1e-3, rtol=1e-3), "mismatch vs reference"

    print("KERNEL_OK")
</pallas_src>

<mosaic_0001>
module attributes {stable_mosaic.version = 11 : i64} {
  func.func @_conv_kernel(%arg0: i32, %arg1: memref<1x4x16x16xf32, #tpu.memory_space<vmem>>, %arg2: memref<8x36xf32, #tpu.memory_space<vmem>>, %arg3: memref<8x1xf32, #tpu.memory_space<vmem>>, %arg4: memref<1x8x384xf32, #tpu.memory_space<vmem>>, %arg5: memref<4x512xf32, #tpu.memory_space<vmem>>, %arg6: memref<36x384xf32, #tpu.memory_space<vmem>>) attributes {dimension_semantics = [#tpu.dimension_semantics<parallel>], iteration_bounds = array<i64: 2>, scalar_prefetch = 0 : i64, scratch_operands = 2 : i64, tpu.core_type = #tpu.core_type<tc>, window_params = [{transform_indices = @transform_0, window_bounds = array<i64: 1, 4, 16, 16>}, {pipeline_mode = #tpu.pipeline_mode<synchronous>, transform_indices = @transform_1, window_bounds = array<i64: 8, 36>}, {pipeline_mode = #tpu.pipeline_mode<synchronous>, transform_indices = @transform_2, window_bounds = array<i64: 8, 1>}, {transform_indices = @transform_3, window_bounds = array<i64: 1, 8, 384>}]} {
    %cst = arith.constant 0.000000e+00 : f32
    %0 = vector.broadcast %cst : f32 to vector<4x512xf32>
    %c0 = arith.constant 0 : index
    %c0_0 = arith.constant 0 : index
    %1 = vector.load %arg5[%c0, %c0_0] : memref<4x512xf32, #tpu.memory_space<vmem>>, vector<4x512xf32>
    tpu.vector_store %arg5[%c0, %c0_0], %0 {strides = array<i32>} : memref<4x512xf32, #tpu.memory_space<vmem>>, vector<4x512xf32>,
    %c0_1 = arith.constant 0 : index
    %c0_2 = arith.constant 0 : index
    %c0_3 = arith.constant 0 : index
    %c0_4 = arith.constant 0 : index
    %2 = vector.load %arg1[%c0_1, %c0_2, %c0_3, %c0_4] : memref<1x4x16x16xf32, #tpu.memory_space<vmem>>, vector<1x4x16x16xf32>
    %3 = vector.shape_cast %2 : vector<1x4x16x16xf32> to vector<4x16x16xf32>
    %4 = vector.extract_strided_slice %3 {offsets = [0, 0, 0], sizes = [4, 1, 16], strides = [1, 1, 1]} : vector<4x16x16xf32> to vector<4x1x16xf32>
    %5 = vector.shape_cast %4 : vector<4x1x16xf32> to vector<4x16xf32>
    %c0_5 = arith.constant 0 : index
    %c19 = arith.constant 19 : index
    %6 = vector.load %arg5[%c0_5, %c19] : memref<4x512xf32, #tpu.memory_space<vmem>>, vector<4x16xf32>
    tpu.vector_store %arg5[%c0_5, %c19], %5 {strides = array<i32>} : memref<4x512xf32, #tpu.memory_space<vmem>>, vector<4x16xf32>,
    %7 = vector.extract_strided_slice %3 {offsets = [0, 1, 0], sizes = [4, 1, 16], strides = [1, 1, 1]} : vector<4x16x16xf32> to vector<4x1x16xf32>
    %8 = vector.shape_cast %7 : vector<4x1x16xf32> to vector<4x16xf32>
    %c0_6 = arith.constant 0 : index
    %c37 = arith.constant 37 : index
    %9 = vector.load %arg5[%c0_6, %c37] : memref<4x512xf32, #tpu.memory_space<vmem>>, vector<4x16xf32>
    tpu.vector_store %arg5[%c0_6, %c37], %8 {strides = array<i32>} : memref<4x512xf32, #tpu.memory_space<vmem>>, vector<4x16xf32>,
    %10 = vector.extract_strided_slice %3 {offsets = [0, 2, 0], sizes = [4, 1, 16], strides = [1, 1, 1]} : vector<4x16x16xf32> to vector<4x1x16xf32>
    %11 = vector.shape_cast %10 : vector<4x1x16xf32> to vector<4x16xf32>
    %c0_7 = arith.constant 0 : index
    %c55 = arith.constant 55 : index
    %12 = vector.load %arg5[%c0_7, %c55] : memref<4x512xf32, #tpu.memory_space<vmem>>, vector<4x16xf32>
    tpu.vector_store %arg5[%c0_7, %c55], %11 {strides = array<i32>} : memref<4x512xf32, #tpu.memory_space<vmem>>, vector<4x16xf32>,
    %13 = vector.extract_strided_slice %3 {offsets = [0, 3, 0], sizes = [4, 1, 16], strides = [1, 1, 1]} : vector<4x16x16xf32> to vector<4x1x16xf32>
    %14 = vector.shape_cast %13 : vector<4x1x16xf32> to vector<4x16xf32>
    %c0_8 = arith.constant 0 : index
    %c73 = arith.constant 73 : index
    %15 = vector.load %arg5[%c0_8, %c73] : memref<4x512xf32, #tpu.memory_space<vmem>>, vector<4x16xf32>
    tpu.vector_store %arg5[%c0_8, %c73], %14 {strides = array<i32>} : memref<4x512xf32, #tpu.memory_space<vmem>>, vector<4x16xf32>,
    %16 = vector.extract_strided_slice %3 {offsets = [0, 4, 0], sizes = [4, 1, 16], strides = [1, 1, 1]} : vector<4x16x16xf32> to vector<4x1x16xf32>
    %17 = vector.shape_cast %16 : vector<4x1x16xf32> to vector<4x16xf32>
    %c0_9 = arith.constant 0 : index
    %c91 = arith.constant 91 : index
    %18 = vector.load %arg5[%c0_9, %c91] : memref<4x512xf32, #tpu.memory_space<vmem>>, vector<4x16xf32>
    tpu.vector_store %arg5[%c0_9, %c91], %17 {strides = array<i32>} : memref<4x512xf32, #tpu.memory_space<vmem>>, vector<4x16xf32>,
    %19 = vector.extract_strided_slice %3 {offsets = [0, 5, 0], sizes = [4, 1, 16], strides = [1, 1, 1]} : vector<4x16x16xf32> to vector<4x1x16xf32>
    %20 = vector.shape_cast %19 : vector<4x1x16xf32> to vector<4x16xf32>
    %c0_10 = arith.constant 0 : index
    %c109 = arith.constant 109 : index
    %21 = vector.load %arg5[%c0_10, %c109] : memref<4x512xf32, #tpu.memory_space<vmem>>, vector<4x16xf32>
    tpu.vector_store %arg5[%c0_10, %c109], %20 {strides = array<i32>} : memref<4x512xf32, #tpu.memory_space<vmem>>, vector<4x16xf32>,
    %22 = vector.extract_strided_slice %3 {offsets = [0, 6, 0], sizes = [4, 1, 16], strides = [1, 1, 1]} : vector<4x16x16xf32> to vector<4x1x16xf32>
    %23 = vector.shape_cast %22 : vector<4x1x16xf32> to vector<4x16xf32>
    %c0_11 = arith.constant 0 : index
    %c127 = arith.constant 127 : index
    %24 = vector.load %arg5[%c0_11, %c127] : memref<4x512xf32, #tpu.memory_space<vmem>>, vector<4x16xf32>
    tpu.vector_store %arg5[%c0_11, %c127], %23 {strides = array<i32>} : memref<4x512xf32, #tpu.memory_space<vmem>>, vector<4x16xf32>,
    %25 = vector.extract_strided_slice %3 {offsets = [0, 7, 0], sizes = [4, 1, 16], strides = [1, 1, 1]} : vector<4x16x16xf32> to vector<4x1x16xf32>
    %26 = vector.shape_cast %25 : vector<4x1x16xf32> to vector<4x16xf32>
    %c0_12 = arith.constant 0 : index
    %c145 = arith.constant 145 : index
    %27 = vector.load %arg5[%c0_12, %c145] : memref<4x512xf32, #tpu.memory_space<vmem>>, vector<4x16xf32>
    tpu.vector_store %arg5[%c0_12, %c145], %26 {strides = array<i32>} : memref<4x512xf32, #tpu.memory_space<vmem>>, vector<4x16xf32>,
    %28 = vector.extract_strided_slice %3 {offsets = [0, 8, 0], sizes = [4, 1, 16], strides = [1, 1, 1]} : vector<4x16x16xf32> to vector<4x1x16xf32>
    %29 = vector.shape_cast %28 : vector<4x1x16xf32> to vector<4x16xf32>
    %c0_13 = arith.constant 0 : index
    %c163 = arith.constant 163 : index
    %30 = vector.load %arg5[%c0_13, %c163] : memref<4x512xf32, #tpu.memory_space<vmem>>, vector<4x16xf32>
    tpu.vector_store %arg5[%c0_13, %c163], %29 {strides = array<i32>} : memref<4x512xf32, #tpu.memory_space<vmem>>, vector<4x16xf32>,
    %31 = vector.extract_strided_slice %3 {offsets = [0, 9, 0], sizes = [4, 1, 16], strides = [1, 1, 1]} : vector<4x16x16xf32> to vector<4x1x16xf32>
    %32 = vector.shape_cast %31 : vector<4x1x16xf32> to vector<4x16xf32>
    %c0_14 = arith.constant 0 : index
    %c181 = arith.constant 181 : index
    %33 = vector.load %arg5[%c0_14, %c181] : memref<4x512xf32, #tpu.memory_space<vmem>>, vector<4x16xf32>
    tpu.vector_store %arg5[%c0_14, %c181], %32 {strides = array<i32>} : memref<4x512xf32, #tpu.memory_space<vmem>>, vector<4x16xf32>,
    %34 = vector.extract_strided_slice %3 {offsets = [0, 10, 0], sizes = [4, 1, 16], strides = [1, 1, 1]} : vector<4x16x16xf32> to vector<4x1x16xf32>
    %35 = vector.shape_cast %34 : vector<4x1x16xf32> to vector<4x16xf32>
    %c0_15 = arith.constant 0 : index
    %c199 = arith.constant 199 : index
    %36 = vector.load %arg5[%c0_15, %c199] : memref<4x512xf32, #tpu.memory_space<vmem>>, vector<4x16xf32>
    tpu.vector_store %arg5[%c0_15, %c199], %35 {strides = array<i32>} : memref<4x512xf32, #tpu.memory_space<vmem>>, vector<4x16xf32>,
    %37 = vector.extract_strided_slice %3 {offsets = [0, 11, 0], sizes = [4, 1, 16], strides = [1, 1, 1]} : vector<4x16x16xf32> to vector<4x1x16xf32>
    %38 = vector.shape_cast %37 : vector<4x1x16xf32> to vector<4x16xf32>
    %c0_16 = arith.constant 0 : index
    %c217 = arith.constant 217 : index
    %39 = vector.load %arg5[%c0_16, %c217] : memref<4x512xf32, #tpu.memory_space<vmem>>, vector<4x16xf32>
    tpu.vector_store %arg5[%c0_16, %c217], %38 {strides = array<i32>} : memref<4x512xf32, #tpu.memory_space<vmem>>, vector<4x16xf32>,
    %40 = vector.extract_strided_slice %3 {offsets = [0, 12, 0], sizes = [4, 1, 16], strides = [1, 1, 1]} : vector<4x16x16xf32> to vector<4x1x16xf32>
    %41 = vector.shape_cast %40 : vector<4x1x16xf32> to vector<4x16xf32>
    %c0_17 = arith.constant 0 : index
    %c235 = arith.constant 235 : index
    %42 = vector.load %arg5[%c0_17, %c235] : memref<4x512xf32, #tpu.memory_space<vmem>>, vector<4x16xf32>
    tpu.vector_store %arg5[%c0_17, %c235], %41 {strides = array<i32>} : memref<4x512xf32, #tpu.memory_space<vmem>>, vector<4x16xf32>,
    %43 = vector.extract_strided_slice %3 {offsets = [0, 13, 0], sizes = [4, 1, 16], strides = [1, 1, 1]} : vector<4x16x16xf32> to vector<4x1x16xf32>
    %44 = vector.shape_cast %43 : vector<4x1x16xf32> to vector<4x16xf32>
    %c0_18 = arith.constant 0 : index
    %c253 = arith.constant 253 : index
    %45 = vector.load %arg5[%c0_18, %c253] : memref<4x512xf32, #tpu.memory_space<vmem>>, vector<4x16xf32>
    tpu.vector_store %arg5[%c0_18, %c253], %44 {strides = array<i32>} : memref<4x512xf32, #tpu.memory_space<vmem>>, vector<4x16xf32>,
    %46 = vector.extract_strided_slice %3 {offsets = [0, 14, 0], sizes = [4, 1, 16], strides = [1, 1, 1]} : vector<4x16x16xf32> to vector<4x1x16xf32>
    %47 = vector.shape_cast %46 : vector<4x1x16xf32> to vector<4x16xf32>
    %c0_19 = arith.constant 0 : index
    %c271 = arith.constant 271 : index
    %48 = vector.load %arg5[%c0_19, %c271] : memref<4x512xf32, #tpu.memory_space<vmem>>, vector<4x16xf32>
    tpu.vector_store %arg5[%c0_19, %c271], %47 {strides = array<i32>} : memref<4x512xf32, #tpu.memory_space<vmem>>, vector<4x16xf32>,
    %49 = vector.extract_strided_slice %3 {offsets = [0, 15, 0], sizes = [4, 1, 16], strides = [1, 1, 1]} : vector<4x16x16xf32> to vector<4x1x16xf32>
    %50 = vector.shape_cast %49 : vector<4x1x16xf32> to vector<4x16xf32>
    %c0_20 = arith.constant 0 : index
    %c289 = arith.constant 289 : index
    %51 = vector.load %arg5[%c0_20, %c289] : memref<4x512xf32, #tpu.memory_space<vmem>>, vector<4x16xf32>
    tpu.vector_store %arg5[%c0_20, %c289], %50 {strides = array<i32>} : memref<4x512xf32, #tpu.memory_space<vmem>>, vector<4x16xf32>,
    %c0_21 = arith.constant 0 : index
    %c0_22 = arith.constant 0 : index
    %52 = vector.load %arg5[%c0_21, %c0_22] : memref<4x512xf32, #tpu.memory_space<vmem>>, vector<4x512xf32>
    %53 = vector.extract_strided_slice %52 {offsets = [0, 0], sizes = [4, 384], strides = [1, 1]} : vector<4x512xf32> to vector<4x384xf32>
    %c0_23 = arith.constant 0 : index
    %c0_24 = arith.constant 0 : index
    %54 = vector.load %arg6[%c0_23, %c0_24] : memref<36x384xf32, #tpu.memory_space<vmem>>, vector<4x384xf32>
    tpu.vector_store %arg6[%c0_23, %c0_24], %53 {strides = array<i32>} : memref<36x384xf32, #tpu.memory_space<vmem>>, vector<4x384xf32>,
    %55 = vector.extract_strided_slice %52 {offsets = [0, 1], sizes = [4, 384], strides = [1, 1]} : vector<4x512xf32> to vector<4x384xf32>
    %c4 = arith.constant 4 : index
    %c0_25 = arith.constant 0 : index
    %56 = vector.load %arg6[%c4, %c0_25] : memref<36x384xf32, #tpu.memory_space<vmem>>, vector<4x384xf32>
    tpu.vector_store %arg6[%c4, %c0_25], %55 {strides = array<i32>} : memref<36x384xf32, #tpu.memory_space<vmem>>, vector<4x384xf32>,
    %57 = vector.extract_strided_slice %52 {offsets = [0, 2], sizes = [4, 384], strides = [1, 1]} : vector<4x512xf32> to vector<4x384xf32>
    %c8 = arith.constant 8 : index
    %c0_26 = arith.constant 0 : index
    %58 = vector.load %arg6[%c8, %c0_26] : memref<36x384xf32, #tpu.memory_space<vmem>>, vector<4x384xf32>
    tpu.vector_store %arg6[%c8, %c0_26], %57 {strides = array<i32>} : memref<36x384xf32, #tpu.memory_space<vmem>>, vector<4x384xf32>,
    %59 = vector.extract_strided_slice %52 {offsets = [0, 18], sizes = [4, 384], strides = [1, 1]} : vector<4x512xf32> to vector<4x384xf32>
    %c12 = arith.constant 12 : index
    %c0_27 = arith.constant 0 : index
    %60 = vector.load %arg6[%c12, %c0_27] : memref<36x384xf32, #tpu.memory_space<vmem>>, vector<4x384xf32>
    tpu.vector_store %arg6[%c12, %c0_27], %59 {strides = array<i32>} : memref<36x384xf32, #tpu.memory_space<vmem>>, vector<4x384xf32>,
    %61 = vector.extract_strided_slice %52 {offsets = [0, 19], sizes = [4, 384], strides = [1, 1]} : vector<4x512xf32> to vector<4x384xf32>
    %c16 = arith.constant 16 : index
    %c0_28 = arith.constant 0 : index
    %62 = vector.load %arg6[%c16, %c0_28] : memref<36x384xf32, #tpu.memory_space<vmem>>, vector<4x384xf32>
    tpu.vector_store %arg6[%c16, %c0_28], %61 {strides = array<i32>} : memref<36x384xf32, #tpu.memory_space<vmem>>, vector<4x384xf32>,
    %63 = vector.extract_strided_slice %52 {offsets = [0, 20], sizes = [4, 384], strides = [1, 1]} : vector<4x512xf32> to vector<4x384xf32>
    %c20 = arith.constant 20 : index
    %c0_29 = arith.constant 0 : index
    %64 = vector.load %arg6[%c20, %c0_29] : memref<36x384xf32, #tpu.memory_space<vmem>>, vector<4x384xf32>
    tpu.vector_store %arg6[%c20, %c0_29], %63 {strides = array<i32>} : memref<36x384xf32, #tpu.memory_space<vmem>>, vector<4x384xf32>,
    %65 = vector.extract_strided_slice %52 {offsets = [0, 36], sizes = [4, 384], strides = [1, 1]} : vector<4x512xf32> to vector<4x384xf32>
    %c24 = arith.constant 24 : index
    %c0_30 = arith.constant 0 : index
    %66 = vector.load %arg6[%c24, %c0_30] : memref<36x384xf32, #tpu.memory_space<vmem>>, vector<4x384xf32>
    tpu.vector_store %arg6[%c24, %c0_30], %65 {strides = array<i32>} : memref<36x384xf32, #tpu.memory_space<vmem>>, vector<4x384xf32>,
    %67 = vector.extract_strided_slice %52 {offsets = [0, 37], sizes = [4, 384], strides = [1, 1]} : vector<4x512xf32> to vector<4x384xf32>
    %c28 = arith.constant 28 : index
    %c0_31 = arith.constant 0 : index
    %68 = vector.load %arg6[%c28, %c0_31] : memref<36x384xf32, #tpu.memory_space<vmem>>, vector<4x384xf32>
    tpu.vector_store %arg6[%c28, %c0_31], %67 {strides = array<i32>} : memref<36x384xf32, #tpu.memory_space<vmem>>, vector<4x384xf32>,
    %69 = vector.extract_strided_slice %52 {offsets = [0, 38], sizes = [4, 384], strides = [1, 1]} : vector<4x512xf32> to vector<4x384xf32>
    %c32 = arith.constant 32 : index
    %c0_32 = arith.constant 0 : index
    %70 = vector.load %arg6[%c32, %c0_32] : memref<36x384xf32, #tpu.memory_space<vmem>>, vector<4x384xf32>
    tpu.vector_store %arg6[%c32, %c0_32], %69 {strides = array<i32>} : memref<36x384xf32, #tpu.memory_space<vmem>>, vector<4x384xf32>,
    %c0_33 = arith.constant 0 : index
    %c0_34 = arith.constant 0 : index
    %71 = vector.load %arg2[%c0_33, %c0_34] : memref<8x36xf32, #tpu.memory_space<vmem>>, vector<8x36xf32>
    %c0_35 = arith.constant 0 : index
    %c0_36 = arith.constant 0 : index
    %72 = vector.load %arg6[%c0_35, %c0_36] : memref<36x384xf32, #tpu.memory_space<vmem>>, vector<36x384xf32>
    %cst_37 = arith.constant dense<0.000000e+00> : vector<8x384xf32>
    %73 = tpu.matmul %71, %72, %cst_37 {dimension_numbers = #tpu.dot_dimension_numbers<[1], [0], [0], [1], [0, 0, 1, 1], [], []>} : vector<8x36xf32>, vector<36x384xf32>, vector<8x384xf32> -> vector<8x384xf32>
    %c0_38 = arith.constant 0 : index
    %c0_39 = arith.constant 0 : index
    %74 = vector.load %arg3[%c0_38, %c0_39] : memref<8x1xf32, #tpu.memory_space<vmem>>, vector<8x1xf32>
    %75 = vector.broadcast %74 : vector<8x1xf32> to vector<8x384xf32>
    %76 = arith.addf %73, %75 : vector<8x384xf32>
    %cst_40 = arith.constant 0.000000e+00 : f32
    %77 = vector.broadcast %cst_40 : f32 to vector<8x384xf32>
    %78 = arith.maximumf %76, %77 : vector<8x384xf32>
    %c0_41 = arith.constant 0 : index
    %c0_42 = arith.constant 0 : index
    %c0_43 = arith.constant 0 : index
    %79 = vector.load %arg4[%c0_41, %c0_42, %c0_43] : memref<1x8x384xf32, #tpu.memory_space<vmem>>, vector<1x8x384xf32>
    %80 = vector.shape_cast %79 : vector<1x8x384xf32> to vector<8x384xf32>
    %81 = vector.shape_cast %78 : vector<8x384xf32> to vector<1x8x384xf32>
    tpu.vector_store %arg4[%c0_41, %c0_42, %c0_43], %81 {strides = array<i32>} : memref<1x8x384xf32, #tpu.memory_space<vmem>>, vector<1x8x384xf32>,
    return
  }
  func.func @transform_0(%arg0: i32) -> (i32, i32, i32, i32) {
    %c0_i32 = arith.constant 0 : i32
    %c0_i32_0 = arith.constant 0 : i32
    %c0_i32_1 = arith.constant 0 : i32
    %c0_i32_2 = arith.constant 0 : i32
    return %arg0, %c0_i32, %c0_i32_0, %c0_i32_1 : i32, i32, i32, i32
  }
  func.func @transform_1(%arg0: i32) -> (i32, i32) {
    %c0_i32 = arith.constant 0 : i32
    %c0_i32_0 = arith.constant 0 : i32
    %c0_i32_1 = arith.constant 0 : i32
    return %c0_i32, %c0_i32_0 : i32, i32
  }
  func.func @transform_2(%arg0: i32) -> (i32, i32) {
    %c0_i32 = arith.constant 0 : i32
    %c0_i32_0 = arith.constant 0 : i32
    %c0_i32_1 = arith.constant 0 : i32
    return %c0_i32, %c0_i32_0 : i32, i32
  }
  func.func @transform_3(%arg0: i32) -> (i32, i32, i32) {
    %c0_i32 = arith.constant 0 : i32
    %c0_i32_0 = arith.constant 0 : i32
    %c0_i32_1 = arith.constant 0 : i32
    return %arg0, %c0_i32, %c0_i32_0 : i32, i32, i32
  }
}

</mosaic_0001>

<bundles_post_ra>
// kernel: tpu_custom_call.1
= control target key start
LH: loop header
LB: loop body
LE: loop exit
PB: predicated region body
PF: predicated region fallthrough
CT: control target
= control target key end

     0   :  { %8 = vsyncpa [#allocation5], 0  ;;  %s1593_s0 = inlined_call_operand.hbm [shape: f32[2,4,16,16], index: 0, kind: input, shape index: {}]   ;;  %s1594_s1 = inlined_call_operand.vmem [shape: f32[8,36], index: 1, kind: input, shape index: {}]   ;;  %s1595_s2 = inlined_call_operand.vmem [shape: f32[8,1], index: 2, kind: input, shape index: {}]   ;;  %s1596_s3 = inlined_call_operand.hbm [shape: f32[2,8,384], index: 3, kind: output, shape index: {}]  }
   0x1   :  { %10 = vsyncpa [#allocation5 + $0x1], 0 }
   0x2   :  { %11 = vsyncpa [#allocation6], 0 }
   0x3   :  { %13 = vsyncpa [#allocation6 + $0x1], 0  ;;  %s1188_s12 = smov 0   ;;  %s1190_s13 = smov 0  }
   0x4   :  { %s1192_s14 = smov 0   ;;  %s1194_s15 = smov 0  }
   0x5 LB: > { %s1209_s16 = sadd.s32 4294967295, %s1141_s15   ;;  %s953_s17 = sadd.s32 4294967294, %s1141_s15   ;;  %s1141_s15 = sphi %s1194_s15, %s1606_s15   ;;  %s1137_s14 = sphi %s1192_s14, %s1605_s14   ;;  %s1133_s13 = sphi %s1190_s13, %s1604_s13   ;;  %s1129_s12 = sphi %s1188_s12, %s1603_s12  }
   0x6   : > { %s1213_s18 = sadd.s32 1, %s1141_s15   ;;  %s26_s19 = sadd.s32 1, %s1137_s14 }
   0x7   : > { %s23_s20 = ssub.s32 %s1141_s15, %s1213_s18  ;;  %p33_p0 = scmp.ne.s32.totalorder %s1137_s14, %s1133_s13 }
   0x8   : > { %p24_p1 = scmp.eq.s32.totalorder %s23_s20, 0  ;;  %p34_p2 = scmp.eq.s32.totalorder %s1141_s15, 0 }
   0x9   : > { %p39_p3 = scmp.ne.s32.totalorder %s1133_s13, %s1129_s12  ;;  %p40_p4 = scmp.eq.s32.totalorder %s1209_s16, 0 }
   0xa   : > { %s1225_s21 = scalar_select %p24_p1, %s1137_s14, %s26_s19  }
   0xb   : > { %p1227_p5 = por %p34_p2, %p33_p0  ;;  %p1231_p6 = por %p40_p4, %p39_p3 }
   0xc   : > { %p105_p7 = scmp.eq.s32.totalorder %s1209_s16, 1  ;;  %p111_p8 = scmp.eq.s32.totalorder %s953_s17, 1 }
   0xd   : > { %p985_p10 = scmp.lt.s32.totalorder %s1141_s15, 2  ;;  %s137_s26 = sand.u32 1, %s1137_s14  }
   0xe   : > { %p1238_p11 = por %p105_p7, %p33_p0  ;;  %p1242_p12 = por %p111_p8, %p39_p3 }
   0xf   : > { %s970_s27 = sshll.u32 %s1141_s15, 6  ;;  %s956_s28 = sshll.u32 %s137_s26, 6 }
  0x10   : > { %s146_s4 = scalar_lea.hbm %s1593_s0, %s970_s27  ;;  %s141_s6 = scalar_lea.vmem [#allocation4], %s956_s28 }
  0x11   : > { %s147_s5 = sshll.u32 %s146_s4, 4  ;;  %s149_s7 = sshll.u32 %s141_s6, 4  ;;  %s148_s5 = int_to_ptr.hbm [resolvable:$true] %s147_s5  ;;  %s150_s7 = int_to_ptr.vmem [resolvable:$true] %s149_s7 }
  0x12   : > { %p1253_p13 = pnand %p985_p10, %p1227_p5  ;;  %p959_p0 = scmp.ge.s32.totalorder %s1141_s15, 1 }
  0x13   : > { %p157_p1 = scmp.lt.s32.totalorder %s1141_s15, 3  ;;  %s138_s9 = scalar_lea.sflag [#allocation5], %s137_s26 }
  0x14   : > { %s1045_s10 = sshra.s32 %s148_s5, 4  ;;  %p1049_p3 = pneg %p1253_p13  ;;  %s1046_s10 = int_to_ptr.hbm [resolvable:$true] %s1045_s10 }
  0x15   : > { %s1047_s11 = scalar_lea.hbm %s1046_s10, 64  ;;  %s1052_s20 = scalar_lea.hbm %s1593_s0, 128 }
  0x16   : > { %p1048_p2 = scmp.ne.s32.totalorder %s1046_s10, %s1047_s11  ;;  %p1053_p5 = scmp.lt.s32.totalorder %s1046_s10, %s1593_s0 }
  0x17   : > { %p1054_p8 = scmp.lt.s32.totalorder %s1052_s20, %s1047_s11 }
  0x18   : > { %p1050_p4 = pnand %p1049_p3, %p1048_p2 }
  0x19   : > { %p1055_p10 = por %p1054_p8, %p1053_p5 }
  0x1a   : > { %p1051_p7 = pneg %p1050_p4 }
  0x1c   : > { %p1056_p9 = pnand %p1055_p10, %p1051_p7 }
  0x1e   : > { %1059 = shalt.err (!%p1056_p9)
}
  0x1f   : > { %s1143_s26 = smov 128   ;;  %s1144_s28 = smov 8  }
  0x20   : > { %980 = dma.hbm_to_vmem [thread:$0]  (!%p1253_p13), %s148_s5, 1024, %s150_s7, %s138_s9, %s1143_s26, %s1143_s26, %s1144_s28  }
  0x21   : > { %p158_p2 = pnand %p959_p0, %p157_p1 }
  0x22   : > { %s1274_s29 = sand.u32 (!%p158_p2), 1, %s1133_s13  }
  0x23   : > { %161 = sbr.rel (%p158_p2) target bundleno = 613 (0x265), region = 32  ;;  %s960_s30 = sshll.u32 (!%p158_p2), %s1274_s29, 6 }
  0x24   : > { %s164_s4 = scalar_lea.sflag (!%p158_p2), [#allocation5], %s1274_s29  ;;  %s1278_s6 = scalar_lea.vmem (!%p158_p2), [#allocation4], %s960_s30 }
  0x28   : > { %1120 = dma.done.wait (%p1231_p6), %s164_s4, 1024  }
  0x29   : > { %1122 = vsyncadd (%p1231_p6), %s164_s4, 4294966272  ;;  %vm206_vm0 = vcmask 1041409   ;;  %vm208_vm1 = vcmask 1045509   ;;  %vm211_vm2 = vcmask 1042434   ;;  %v1285_v0 = vld [vmem:[%s1278_s6] sm:$0xff]  ;;  %v1288_v1 = vld [vmem:[%s1278_s6 + $0x10] sm:$0xff] }
  0x2a   : > { %v1291_v2 = vld [vmem:[%s1278_s6 + $0x20] sm:$0xff]  ;;  %vm213_vm3 = vcmask 1046534   ;;  %vm216_vm4 = vcmask 1043459   ;;  %vm218_vm5 = vcmask 1047559   ;;  %v1294_v3 = vld [vmem:[%s1278_s6 + $0x30] sm:$0xff]  ;;  %v205_v4 = vrot.slane %v1288_v1, 7 }
  0x2b   : > { %v210_v5 = vrot.slane %v1291_v2, 6  ;;  %267 = vst.sshfl [vmem:[#allocation1] sm:$0xff pattern:$0x75316420] %v1285_v0  ;;  %v215_v6 = vrot.slane %v1294_v3, 5  ;;  %v239_v7 = vrot.slane %v1285_v0, 2 }
  0x2c   : > { %270 = vst.sshfl [vmem:[#allocation1 + $0x10] sm:$0xff pattern:$0x75316420] %v1288_v1  ;;  %v240_v8 = vrot.slane %v1288_v1, 1  ;;  %v207_v9 = vsel %vm206_vm0, %v205_v4, %v1285_v0  ;;  %v245_v10 = vrot.slane %v1294_v3, 7  ;;  %v225_v11 = vrot.slane %v1285_v0, 1 }
  0x2d   : > { %273 = vst.sshfl [vmem:[#allocation1 + $0x20] sm:$0xff pattern:$0x75316420] %v1291_v2  ;;  %v228_v12 = vrot.slane %v1291_v2, 7  ;;  %v209_v13 = vsel %vm208_vm1, %v205_v4, %v207_v9  ;;  %v231_v15 = vrot.slane %v1294_v3, 6  ;;  %v253_v16 = vrot.slane %v1285_v0, 3 }
  0x2e   : > { %276 = vst.sshfl [vmem:[#allocation1 + $0x30] sm:$0xff pattern:$0x75316420] %v1294_v3  ;;  %v241_v14 = vsel %vm206_vm0, %v240_v8, %v239_v7  ;;  %v212_v17 = vsel %vm211_vm2, %v210_v5, %v209_v13  ;;  %v226_v19 = vsel %vm206_vm0, %v1288_v1, %v225_v11  ;;  %v254_v20 = vrot.slane %v1288_v1, 2  ;;  %v1326_v25 = vld [vmem:[%s1278_s6 + $0x8] sm:$0xff]  ;;  %v1343_v36 = vld [vmem:[%s1278_s6 + $0x18] sm:$0xff] }
  0x2f   : > { %v242_v18 = vsel %vm208_vm1, %v240_v8, %v241_v14  ;;  %v214_v21 = vsel %vm213_vm3, %v210_v5, %v212_v17  ;;  %v227_v23 = vsel %vm208_vm1, %v1288_v1, %v226_v19  ;;  %v257_v24 = vrot.slane %v1291_v2, 1  ;;  %v1334_v30 = vld [vmem:[%s1278_s6 + $0x28] sm:$0xff]  ;;  %s1145_s23 = smov 19   ;;  %s1146_s5 = smov 55   ;;  %v1355_v43 = vld [vmem:[%s1278_s6 + $0x38] sm:$0xff] }
  0x30   : > { %v243_v22 = vsel %vm211_vm2, %v1291_v2, %v242_v18  ;;  %v217_v26 = vsel %vm216_vm4, %v215_v6, %v214_v21  ;;  %v229_v28 = vsel %vm211_vm2, %v228_v12, %v227_v23  ;;  %v255_v29 = vsel %vm206_vm0, %v254_v20, %v253_v16  ;;  %s1147_s7 = smov 37   ;;  %s1148_s8 = smov 73  }
  0x31   : > { %v244_v27 = vsel %vm213_vm3, %v1291_v2, %v243_v22  ;;  %v219_v31 = vsel %vm218_vm5, %v215_v6, %v217_v26  ;;  %v230_v34 = vsel %vm213_vm3, %v228_v12, %v229_v28  ;;  %v256_v35 = vsel %vm208_vm1, %v254_v20, %v255_v29  ;;  %s1149_s9 = smov 35   ;;  %s1150_s10 = smov 53  }
  0x32   : > { %v1337_v32 = vld [vmem:[#allocation1 + $0x1] ss:$2 sm:$0xff]  ;;  %v246_v33 = vsel %vm216_vm4, %v245_v10, %v244_v27  ;;  %220 = vrot.lane.b32.xlu0 %v219_v31, %s1145_s23  ;;  %v258_v39 = vsel %vm211_vm2, %v257_v24, %v256_v35  ;;  %v394_v40 = vrot.slane %v1326_v25, 1  ;;  %v232_v41 = vsel %vm216_vm4, %v231_v15, %v230_v34  ;;  %s1151_s11 = smov 71   ;;  %s1152_s17 = smov 91  }
  0x33   : > { %v1345_v37 = vld [vmem:[#allocation1 + $0x11] ss:$2 sm:$0xff]  ;;  %293 = vst.sshfl [vmem:[#allocation1] sm:$0xff pattern:$0x75316420] %v1285_v0  ;;  %v247_v38 = vsel %vm218_vm5, %v245_v10, %v246_v33  ;;  %v259_v42 = vsel %vm213_vm3, %v257_v24, %v258_v39  ;;  %v397_v44 = vrot.slane %v1334_v30, 7  ;;  %v233_v53 = vsel %vm218_vm5, %v231_v15, %v232_v41 }
  0x34   : > { %296 = vst.sshfl [vmem:[#allocation1 + $0x10] sm:$0xff pattern:$0x75316420] %v1288_v1  ;;  %248 = vrot.lane.b32.xlu1 %v247_v38, %s1146_s5  ;;  %v395_v45 = vsel %vm206_vm0, %v1343_v36, %v394_v40  ;;  %v408_v46 = vrot.slane %v1326_v25, 2  ;;  %v409_v47 = vrot.slane %v1343_v36, 1  ;;  %v260_v50 = vsel %vm216_vm4, %v1294_v3, %v259_v42  ;;  %s1153_s19 = smov 109  }
  0x35   : > { %v275_v48 = vld [vmem:[#allocation1 + $0x21] ss:$2 sm:$0xff]  ;;  %v1362_v49 = vld [vmem:[#allocation1 + $0x31] ss:$2 sm:$0xff]  ;;  %v396_v51 = vsel %vm208_vm1, %v1343_v36, %v395_v45  ;;  %v380_v52 = vrot.slane %v1343_v36, 7  ;;  %v383_v56 = vrot.slane %v1334_v30, 6  ;;  %v261_v61 = vsel %vm218_vm5, %v1294_v3, %v260_v50 }
  0x36   : > { %299 = vst.sshfl [vmem:[#allocation1 + $0x20] sm:$0xff pattern:$0x75316420] %v1291_v2  ;;  %v398_v54 = vsel %vm211_vm2, %v397_v44, %v396_v51  ;;  %v410_v55 = vsel %vm206_vm0, %v409_v47, %v408_v46  ;;  %v400_v57 = vrot.slane %v1355_v43, 6  ;;  %v386_v60 = vrot.slane %v1355_v43, 5  ;;  %s1154_s20 = smov 127  }
  0x37   : > { %302 = vst.sshfl [vmem:[#allocation1 + $0x30] sm:$0xff pattern:$0x75316420] %v1294_v3  ;;  %v411_v58 = vsel %vm208_vm1, %v409_v47, %v410_v55  ;;  %v381_v59 = vsel %vm206_vm0, %v380_v52, %v1326_v25  ;;  %v399_v62 = vsel %vm213_vm3, %v397_v44, %v398_v54  ;;  %v414_v6 = vrot.slane %v1355_v43, 7  ;;  %s1155_s22 = smov 89   ;;  %s1156_s27 = smov 17  }
  0x38   : > { %v412_v63 = vsel %vm211_vm2, %v1334_v30, %v411_v58  ;;  %v382_v4 = vsel %vm208_vm1, %v380_v52, %v381_v59  ;;  %v401_v12 = vsel %vm216_vm4, %v400_v57, %v399_v62  ;;  %v422_v14 = vrot.slane %v1326_v25, 3  ;;  %s1158_s26 = smov 107   ;;  %s1159_s28 = smov 125  }
  0x39   : > { %v384_v7 = vsel %vm211_vm2, %v383_v56, %v382_v4  ;;  %v413_v8 = vsel %vm213_vm3, %v1334_v30, %v412_v63  ;;  %v279_v15 = vrot.slane %v1345_v37, 7  ;;  %v423_v19 = vrot.slane %v1343_v36, 2  ;;  %s1160_s30 = smov 15   ;;  %s1161_s4 = smov 33  }
  0x3a   : > { %v295_v5 = vld [vmem:[#allocation1 + $0x1] ss:$2 sm:$0xff]  ;;  %234 = vrot.lane.b32.xlu0 %v233_v53, %s1147_s7  ;;  %v385_v11 = vsel %vm213_vm3, %v383_v56, %v384_v7  ;;  %v282_v20 = vrot.slane %v275_v48, 6  ;;  %v415_v21 = vsel %vm216_vm4, %v414_v6, %v413_v8  ;;  %v285_v28 = vrot.slane %v1362_v49, 5  ;;  %s1162_s6 = smov 126   ;;  %s1163_s23 = smov 110  }
  0x3b   : > { %319 = vst.sshfl [vmem:[#allocation1] sm:$0xff pattern:$0x75316420] %v1285_v0  ;;  %v298_v9 = vld [vmem:[#allocation1 + $0x11] ss:$2 sm:$0xff]  ;;  %v305_v10 = vrot.slane %v295_v5, 1  ;;  %v387_v13 = vsel %vm216_vm4, %v386_v60, %v385_v11  ;;  %v280_v26 = vsel %vm206_vm0, %v279_v15, %v1337_v32  ;;  %v402_v29 = vsel %vm218_vm5, %v400_v57, %v401_v12 }
  0x3c   : > { %262 = vrot.lane.b32.xlu1 %v261_v61, %s1148_s8  ;;  %322 = vst.sshfl [vmem:[#allocation1 + $0x10] sm:$0xff pattern:$0x75316420] %v1288_v1  ;;  %v388_v18 = vsel %vm218_vm5, %v386_v60, %v387_v13  ;;  %v281_v27 = vsel %vm208_vm1, %v279_v15, %v280_v26  ;;  %v416_v34 = vsel %vm218_vm5, %v414_v6, %v415_v21  ;;  %v426_v40 = vrot.slane %v1334_v30, 1  ;;  %s1164_s5 = smov 108   ;;  %s1165_s7 = smov 92  }
  0x3d   : > { %v301_v16 = vld [vmem:[#allocation1 + $0x21] ss:$2 sm:$0xff]  ;;  %v306_v17 = vsel %vm206_vm0, %v298_v9, %v305_v10  ;;  %389 = vrot.lane.b32.xlu2 %v388_v18, %s1149_s9  ;;  %v283_v33 = vsel %vm211_vm2, %v282_v20, %v281_v27  ;;  %v424_v37 = vsel %vm206_vm0, %v423_v19, %v422_v14  ;;  %vm223_vm6 = vcmask 281752   ;;  %s1166_s8 = smov 90  }
  0x3e   : > { %v304_v22 = vld [vmem:[#allocation1 + $0x31] ss:$2 sm:$0xff]  ;;  %v307_v23 = vsel %vm208_vm1, %v298_v9, %v306_v17  ;;  %v308_v24 = vrot.slane %v301_v16, 7  ;;  %325 = vst.sshfl [vmem:[#allocation1 + $0x20] sm:$0xff pattern:$0x75316420] %v1291_v2  ;;  %v284_v38 = vsel %vm213_vm3, %v282_v20, %v283_v33  ;;  %v425_v46 = vsel %vm208_vm1, %v423_v19, %v424_v37 }
  0x3f   : > { %328 = vst.sshfl [vmem:[#allocation1 + $0x30] sm:$0xff pattern:$0x75316420] %v1294_v3  ;;  %v311_v35 = vrot.slane %v304_v22, 6  ;;  %v286_v41 = vsel %vm216_vm4, %v285_v28, %v284_v38  ;;  %v427_v51 = vsel %vm211_vm2, %v426_v40, %v425_v46  ;;  %v1157_v16 = vmov 0.0  }
  0x40   : > { %v309_v31 = vsel %vm211_vm2, %v308_v24, %v307_v23  ;;  %v287_v44 = vsel %vm218_vm5, %v285_v28, %v286_v41  ;;  %191 = vst [vmem:[#allocation2] sm:$0xff] %v1157_v16  ;;  %vm237_vm7 = vcmask 429352   ;;  %vm251_vm8 = vcmask 576952  }
  0x41   : > { %v310_v39 = vsel %vm213_vm3, %v308_v24, %v309_v31  ;;  %192 = vst [vmem:[#allocation2 + $0x8] sm:$0xff] %v1157_v16  ;;  %vm265_vm9 = vcmask 724552   ;;  %vm291_vm10 = vcmask 872152   ;;  %vm343_vm11 = vcmask 1039360  }
  0x42   : > { %v321_v32 = vld [vmem:[#allocation1 + $0x1] ss:$2 sm:$0xff]  ;;  %403 = vrot.lane.b32.xlu0 %v402_v29, %s1150_s10  ;;  %v312_v48 = vsel %vm216_vm4, %v311_v35, %v310_v39  ;;  %vm346_vm12 = vcmask 1044472   ;;  %vm347_vm13 = vcmask 121860   ;;  %vm317_vm14 = vcmask 1019752  }
  0x43   : > { %350 = vst.sshfl [vmem:[#allocation1] sm:$0xff pattern:$0x75316420] %v1285_v0  ;;  %v324_v42 = vld [vmem:[#allocation1 + $0x11] ss:$2 sm:$0xff]  ;;  %v331_v45 = vrot.slane %v321_v32, 2  ;;  %v313_v53 = vsel %vm218_vm5, %v311_v35, %v312_v48  ;;  %vm348_vm15 = vmor %vm347_vm13, %vm346_vm12 }
  0x44   : > { %417 = vrot.lane.b32.xlu1 %v416_v34, %s1151_s11  ;;  %353 = vst.sshfl [vmem:[#allocation1 + $0x10] sm:$0xff pattern:$0x75316420] %v1288_v1  ;;  %v332_v47 = vrot.slane %v324_v42, 1  ;;  %vm543_vm12 = vcmask 396552   ;;  %vm601_vm13 = vcmask 1031168  }
  0x45   : > { %v327_v49 = vld [vmem:[#allocation1 + $0x21] ss:$2 sm:$0xff]  ;;  %288 = vrot.lane.b32.xlu2 %v287_v44, %s1152_s17 }
  0x46   : > { %v330_v50 = vld [vmem:[#allocation1 + $0x31] ss:$2 sm:$0xff]  ;;  %356 = vst.sshfl [vmem:[#allocation1 + $0x20] sm:$0xff pattern:$0x75316420] %v1291_v2  ;;  %v333_v0 = vsel %vm206_vm0, %v332_v47, %v331_v45  ;;  %v428_v2 = vsel %vm213_vm3, %v426_v40, %v427_v51 }
  0x47   : > { %359 = vst.sshfl [vmem:[#allocation1 + $0x30] sm:$0xff pattern:$0x75316420] %v1294_v3  ;;  %v334_v1 = vsel %vm208_vm1, %v332_v47, %v333_v0  ;;  %v337_v52 = vrot.slane %v330_v50, 7  ;;  %v429_v62 = vsel %vm216_vm4, %v1355_v43, %v428_v2 }
  0x48   : > { %v335_v54 = vsel %vm211_vm2, %v327_v49, %v334_v1  ;;  %v430_v8 = vsel %vm218_vm5, %v1355_v43, %v429_v62 }
  0x49   : > { %v336_v55 = vsel %vm213_vm3, %v327_v49, %v335_v54 }
  0x4a   : > { %v352_v56 = vld [vmem:[#allocation1 + $0x1] ss:$2 sm:$0xff]  ;;  %v338_v57 = vsel %vm216_vm4, %v337_v52, %v336_v55  ;;  %314 = vrot.lane.b32.xlu0 %v313_v53, %s1153_s19 }
  0x4b   : > { %v355_v3 = vld [vmem:[#allocation1 + $0x11] ss:$2 sm:$0xff]  ;;  %v362_v58 = vrot.slane %v352_v56, 3  ;;  %436 = vst.sshfl [vmem:[#allocation1] sm:$0xff pattern:$0x75316420] %v1326_v25  ;;  %v339_v59 = vsel %vm218_vm5, %v337_v52, %v338_v57 }
  0x4c   : > { %v363_v60 = vrot.slane %v355_v3, 2  ;;  %439 = vst.sshfl [vmem:[#allocation1 + $0x10] sm:$0xff pattern:$0x75316420] %v1343_v36 }
  0x4d   : > { %v358_v61 = vld [vmem:[#allocation1 + $0x21] ss:$2 sm:$0xff]  ;;  %340 = vrot.lane.b32.xlu2 %v339_v59, %s1154_s20 }
  0x4e   : > { %v361_v63 = vld [vmem:[#allocation1 + $0x31] ss:$2 sm:$0xff]  ;;  %v364_v4 = vsel %vm206_vm0, %v363_v60, %v362_v58  ;;  %v366_v5 = vrot.slane %v358_v61, 1  ;;  %442 = vst.sshfl [vmem:[#allocation1 + $0x20] sm:$0xff pattern:$0x75316420] %v1334_v30 }
  0x4f   : > { %v365_v6 = vsel %vm208_vm1, %v363_v60, %v364_v4  ;;  %445 = vst.sshfl [vmem:[#allocation1 + $0x30] sm:$0xff pattern:$0x75316420] %v1355_v43 }
  0x50   : > { %v367_v7 = vsel %vm211_vm2, %v366_v5, %v365_v6 }
  0x51   : > { %v368_v9 = vsel %vm213_vm3, %v366_v5, %v367_v7 }
  0x52   : > { %v369_v10 = vsel %vm216_vm4, %v361_v63, %v368_v9  ;;  %v438_v11 = vld [vmem:[#allocation1 + $0x1] ss:$2 sm:$0xff]  ;;  %431 = vrot.lane.b32.xlu0 %v430_v8, %s1155_s22 }
  0x53   : > { %v370_v12 = vsel %vm218_vm5, %v361_v63, %v369_v10  ;;  %v441_v13 = vld [vmem:[#allocation1 + $0x11] ss:$2 sm:$0xff]  ;;  %462 = vst.sshfl [vmem:[#allocation1] sm:$0xff pattern:$0x75316420] %v1326_v25 }
  0x54   : > { %371 = vrot.lane.b32.xlu1 %v370_v12, %s1156_s27  ;;  %v448_v14 = vrot.slane %v441_v13, 7  ;;  %465 = vst.sshfl [vmem:[#allocation1 + $0x10] sm:$0xff pattern:$0x75316420] %v1343_v36 }
  0x55   : > { %v444_v15 = vld [vmem:[#allocation1 + $0x21] ss:$2 sm:$0xff] }
  0x56   : > { %v447_v17 = vld [vmem:[#allocation1 + $0x31] ss:$2 sm:$0xff]  ;;  %v449_v18 = vsel %vm206_vm0, %v448_v14, %v438_v11  ;;  %v451_v19 = vrot.slane %v444_v15, 6  ;;  %468 = vst.sshfl [vmem:[#allocation1 + $0x20] sm:$0xff pattern:$0x75316420] %v1334_v30 }
  0x57   : > { %v450_v20 = vsel %vm208_vm1, %v448_v14, %v449_v18  ;;  %v454_v21 = vrot.slane %v447_v17, 5  ;;  %471 = vst.sshfl [vmem:[#allocation1 + $0x30] sm:$0xff pattern:$0x75316420] %v1355_v43 }
  0x58   : > { %v452_v22 = vsel %vm211_vm2, %v451_v19, %v450_v20 }
  0x59   : > { %v453_v23 = vsel %vm213_vm3, %v451_v19, %v452_v22 }
  0x5a   : > { %v455_v24 = vsel %vm216_vm4, %v454_v21, %v453_v23  ;;  %v464_v26 = vld [vmem:[#allocation1 + $0x1] ss:$2 sm:$0xff] }
  0x5b   : > { %v456_v27 = vsel %vm218_vm5, %v454_v21, %v455_v24  ;;  %v467_v28 = vld [vmem:[#allocation1 + $0x11] ss:$2 sm:$0xff]  ;;  %v474_v29 = vrot.slane %v464_v26, 1  ;;  %493 = vst.sshfl [vmem:[#allocation1] sm:$0xff pattern:$0x75316420] %v1326_v25 }
  0x5c   : > { %457 = vrot.lane.b32.xlu1 %v456_v27, %s1158_s26  ;;  %496 = vst.sshfl [vmem:[#allocation1 + $0x10] sm:$0xff pattern:$0x75316420] %v1343_v36 }
  0x5d   : > { %v470_v31 = vld [vmem:[#allocation1 + $0x21] ss:$2 sm:$0xff]  ;;  %v475_v33 = vsel %vm206_vm0, %v467_v28, %v474_v29 }
  0x5e   : > { %v473_v34 = vld [vmem:[#allocation1 + $0x31] ss:$2 sm:$0xff]  ;;  %v476_v35 = vsel %vm208_vm1, %v467_v28, %v475_v33  ;;  %v477_v37 = vrot.slane %v470_v31, 7  ;;  %499 = vst.sshfl [vmem:[#allocation1 + $0x20] sm:$0xff pattern:$0x75316420] %v1334_v30 }
  0x5f   : > { %v480_v38 = vrot.slane %v473_v34, 6  ;;  %502 = vst.sshfl [vmem:[#allocation1 + $0x30] sm:$0xff pattern:$0x75316420] %v1355_v43 }
  0x60   : > { %v478_v32 = vsel %vm211_vm2, %v477_v37, %v476_v35 }
  0x61   : > { %v479_v39 = vsel %vm213_vm3, %v477_v37, %v478_v32 }
  0x62   : > { %v481_v40 = vsel %vm216_vm4, %v480_v38, %v479_v39  ;;  %v495_v41 = vld [vmem:[#allocation1 + $0x1] ss:$2 sm:$0xff] }
  0x63   : > { %v482_v42 = vsel %vm218_vm5, %v480_v38, %v481_v40  ;;  %v498_v44 = vld [vmem:[#allocation1 + $0x11] ss:$2 sm:$0xff]  ;;  %519 = vst.sshfl [vmem:[#allocation1] sm:$0xff pattern:$0x75316420] %v1326_v25  ;;  %v505_v45 = vrot.slane %v495_v41, 2 }
  0x64   : > { %522 = vst.sshfl [vmem:[#allocation1 + $0x10] sm:$0xff pattern:$0x75316420] %v1343_v36  ;;  %483 = vrot.lane.b32.xlu2 %v482_v42, %s1159_s28  ;;  %v506_v46 = vrot.slane %v498_v44, 1 }
  0x65   : > { %v501_v47 = vld [vmem:[#allocation1 + $0x21] ss:$2 sm:$0xff] }
  0x66   : > { %v504_v48 = vld [vmem:[#allocation1 + $0x31] ss:$2 sm:$0xff]  ;;  %525 = vst.sshfl [vmem:[#allocation1 + $0x20] sm:$0xff pattern:$0x75316420] %v1334_v30  ;;  %v507_v49 = vsel %vm206_vm0, %v506_v46, %v505_v45 }
  0x67   : > { %528 = vst.sshfl [vmem:[#allocation1 + $0x30] sm:$0xff pattern:$0x75316420] %v1355_v43  ;;  %v508_v50 = vsel %vm208_vm1, %v506_v46, %v507_v49  ;;  %v511_v0 = vrot.slane %v504_v48, 7 }
  0x68   : > { %v509_v51 = vsel %vm211_vm2, %v501_v47, %v508_v50 }
  0x69   : > { %v510_v25 = vsel %vm213_vm3, %v501_v47, %v509_v51 }
  0x6a   : > { %v521_v1 = vld [vmem:[#allocation1 + $0x1] ss:$2 sm:$0xff]  ;;  %v512_v36 = vsel %vm216_vm4, %v511_v0, %v510_v25 }
  0x6b   : > { %v524_v52 = vld [vmem:[#allocation1 + $0x11] ss:$2 sm:$0xff]  ;;  %v531_v53 = vrot.slane %v521_v1, 3  ;;  %v513_v54 = vsel %vm218_vm5, %v511_v0, %v512_v36 }
  0x6c   : > { %v532_v55 = vrot.slane %v524_v52, 2  ;;  %514 = vrot.lane.b32.xlu2 %v513_v54, %s1160_s30 }
  0x6d   : > { %v527_v30 = vld [vmem:[#allocation1 + $0x21] ss:$2 sm:$0xff] }
  0x6e   : > { %v533_v43 = vsel %vm206_vm0, %v532_v55, %v531_v53  ;;  %v535_v56 = vrot.slane %v527_v30, 1  ;;  %v530_v2 = vld [vmem:[#allocation1 + $0x31] ss:$2 sm:$0xff]  ;;  %vm374_vm0 = vcmask 265352  }
  0x6f   : > { %v534_v57 = vsel %vm208_vm1, %v532_v55, %v533_v43  ;;  %vm392_vm1 = vcmask 412952  }
  0x70   : > { %v536_v3 = vsel %vm211_vm2, %v535_v56, %v534_v57  ;;  %vm406_vm2 = vcmask 560552  }
  0x71   : > { %v537_v58 = vsel %vm213_vm3, %v535_v56, %v536_v3  ;;  %vm420_vm3 = vcmask 708152  }
  0x72   : > { %v538_v59 = vsel %vm216_vm4, %v530_v2, %v537_v58  ;;  %vm434_vm4 = vcmask 855752  }
  0x73   : > { %v539_v60 = vsel %vm218_vm5, %v530_v2, %v538_v59  ;;  %vm486_vm5 = vcmask 1022976  }
  0x74   : > { %540 = vrot.lane.b32.xlu0 %v539_v60, %s1161_s4 }
  0x97   : > { %v390_v61 = vpop.permute.xlu2 %389 }
  0x9f   : > { %v289_v4 = vpop.permute.xlu2 %288 }
  0xa4   : > { %v221_v62 = vpop.permute.xlu0 %220 }
  0xa5   : > { %224 = vst.msk [vmem:[#allocation2] sm:$0xf] %vm223_vm6, %v221_v62  ;;  %vm489_vm6 = vcmask 1044456  }
  0xa6   : > { %v249_v63 = vpop.permute.xlu1 %248 }
  0xa7   : > { %v341_v8 = vpop.permute.xlu2 %340 }
  0xa8   : > { %v342_v9 = vrot.slane %v341_v8, 4 }
  0xaa   : > { %v344_v11 = vsel %vm343_vm11, %v342_v9, %v341_v8 }
  0xac   : > { %v235_v5 = vpop.permute.xlu0 %234 }
  0xad   : > { %238 = vst.msk [vmem:[#allocation2] sm:$0xf] %vm237_vm7, %v235_v5  ;;  %vm490_vm7 = vcmask 105476  }
  0xae   : > { %v263_v6 = vpop.permute.xlu1 %262  ;;  %252 = vst.msk [vmem:[#allocation2] sm:$0xf] %vm251_vm8, %v249_v63  ;;  %vm460_vm8 = vcmask 1003352  }
  0xaf   : > { %266 = vst.msk [vmem:[#allocation2] sm:$0xf] %vm265_vm9, %v263_v6  ;;  %vm491_vm9 = vmor %vm490_vm7, %vm489_vm6 }
  0xb0   : > { %292 = vst.msk [vmem:[#allocation2] sm:$0xf] %vm291_vm10, %v289_v4  ;;  %vm517_vm10 = vcmask 248952  }
  0xb4   : > { %v404_v7 = vpop.permute.xlu0 %403 }
  0xb6   : > { %v418_v10 = vpop.permute.xlu1 %417 }
  0xbc   : > { %v315_v12 = vpop.permute.xlu0 %314 }
  0xbd   : > { %318 = vst.msk [vmem:[#allocation2] sm:$0xf] %vm317_vm14, %v315_v12  ;;  %vm652_vm14 = vcmask 891904  }
  0xbe   : > { %349 = vst.msk [vmem:[#allocation2] sm:$0xff] %vm348_vm15, %v344_v11  ;;  %v484_v14 = vpop.permute.xlu2 %483  ;;  %vm627_vm15 = vcmask 900096  }
  0xbf   : > { %v485_v16 = vrot.slane %v484_v14, 4 }
  0xc1   : > { %v487_v17 = vsel %vm486_vm5, %v485_v16, %v484_v14  ;;  %vm786_vm5 = vcmask 293888  }
  0xc4   : > { %v432_v15 = vpop.permute.xlu0 %431 }
  0xc6   : > { %v372_v13 = vpop.permute.xlu1 %371  ;;  %v515_v19 = vpop.permute.xlu2 %514 }
  0xc7   : > { %375 = vst.msk [vmem:[#allocation2 + $0x4] sm:$0xf] %vm374_vm0, %v372_v13  ;;  %vm678_vm0 = vcmask 883712  }
  0xc8   : > { %393 = vst.msk [vmem:[#allocation2 + $0x4] sm:$0xf] %vm392_vm1, %v390_v61  ;;  %vm703_vm1 = vcmask 752640  }
  0xc9   : > { %407 = vst.msk [vmem:[#allocation2 + $0x4] sm:$0xf] %vm406_vm2, %v404_v7  ;;  %vm729_vm2 = vcmask 744448  }
  0xca   : > { %421 = vst.msk [vmem:[#allocation2 + $0x4] sm:$0xf] %vm420_vm3, %v418_v10  ;;  %vm754_vm3 = vcmask 736256  }
  0xcb   : > { %435 = vst.msk [vmem:[#allocation2 + $0x4] sm:$0xf] %vm434_vm4, %v432_v15  ;;  %vm790_vm4 = vcmask 1043456  }
  0xce   : > { %v458_v18 = vpop.permute.xlu1 %457 }
  0xcf   : > { %461 = vst.msk [vmem:[#allocation2 + $0x4] sm:$0xf] %vm460_vm8, %v458_v18 }
  0xd0   : > { %492 = vst.msk [vmem:[#allocation2 + $0x4] sm:$0xff] %vm491_vm9, %v487_v17 }
  0xd1   : > { %518 = vst.msk [vmem:[#allocation2 + $0x8] sm:$0xf] %vm517_vm10, %v515_v19 }
  0xd7   : > { %v545_v20 = vld [vmem:[#allocation2] sm:$0xff] }
  0xd8   : > { %549 = vst [vmem:[#allocation1] ss:$2 sm:$0xff] %v545_v20 }
  0xdf   : > { %v552_v21 = vld.sshfl [vmem:[#allocation1] sm:$0xff pattern:$0x75316420]  ;;  %v553_v22 = vld.sshfl [vmem:[#allocation1 + $0x8] sm:$0xff pattern:$0x75316420] }
  0xe0   : > { %562 = vst [vmem:[#allocation1 + $0x1] ss:$2 sm:$0xff] %v545_v20 }
  0xe1   : > { %558 = vst [vmem:[#allocation3 + $0x30] sm:$0xf] %v552_v21 }
  0xe2   : > { %559 = vst [vmem:[#allocation3] sm:$0xf] %v553_v22 }
  0xe6   : > { %v541_v23 = vpop.permute.xlu0 %540 }
  0xe7   : > { %v1487_v24 = vld.sshfl [vmem:[#allocation1] sm:$0xff pattern:$0x75316420]  ;;  %v1489_v26 = vld.sshfl [vmem:[#allocation1 + $0x8] sm:$0xff pattern:$0x75316420] }
  0xe8   : > { %586 = vst [vmem:[#allocation1] ss:$2 sm:$0xff] %v545_v20 }
  0xe9   : > { %544 = vst.msk [vmem:[#allocation2 + $0x8] sm:$0xf] %vm543_vm12, %v541_v23 }
  0xef   : > { %v1491_v27 = vld.sshfl [vmem:[#allocation1] sm:$0xff pattern:$0x75316420]  ;;  %v1493_v28 = vld.sshfl [vmem:[#allocation1 + $0x8] sm:$0xff pattern:$0x75316420] }
  0xf0   : > { %v546_v29 = vld [vmem:[#allocation2 + $0x8] sm:$0xff]  ;;  %612 = vst [vmem:[#allocation1 + $0x1] ss:$2 sm:$0xff] %v545_v20 }
  0xf1   : > { %551 = vst [vmem:[#allocation1 + $0x10] ss:$2 sm:$0xff] %v546_v29 }
  0xf7   : > { %v1495_v31 = vld.sshfl [vmem:[#allocation1] sm:$0xff pattern:$0x75316420]  ;;  %v1497_v33 = vld.sshfl [vmem:[#allocation1 + $0x8] sm:$0xff pattern:$0x75316420] }
  0xf8   : > { %v554_v34 = vld.sshfl [vmem:[#allocation1 + $0x10] sm:$0xff pattern:$0x75316420]  ;;  %637 = vst [vmem:[#allocation1] ss:$2 sm:$0xff] %v545_v20 }
  0xf9   : > { %564 = vst [vmem:[#allocation1 + $0x11] ss:$2 sm:$0xff] %v546_v29 }
  0xfa   : > { %560 = vst [vmem:[#allocation3 + $0x58] sm:$0xf] %v554_v34 }
  0xff   : > { %v641_v35 = vld.sshfl [vmem:[#allocation1 + $0x8] sm:$0xff pattern:$0x75316420]  ;;  %v640_v37 = vld.sshfl [vmem:[#allocation1] sm:$0xff pattern:$0x75316420] }
 0x100   : > { %v568_v38 = vld.sshfl [vmem:[#allocation1 + $0x18] sm:$0xff pattern:$0x75316420]  ;;  %v567_v32 = vld.sshfl [vmem:[#allocation1 + $0x10] sm:$0xff pattern:$0x75316420] }
 0x101   : > { %575 = vrot.lane.b32.xlu0 %v568_v38, %s1154_s20  ;;  %573 = vrot.lane.b32.xlu2 %v567_v32, %s1154_s20  ;;  %588 = vst [vmem:[#allocation1 + $0x10] ss:$2 sm:$0xff] %v546_v29 }
 0x102   : > { %663 = vst [vmem:[#allocation1 + $0x1] ss:$2 sm:$0xff] %v545_v20 }
 0x108   : > { %v592_v39 = vld.sshfl [vmem:[#allocation1 + $0x18] sm:$0xff pattern:$0x75316420]  ;;  %v591_v40 = vld.sshfl [vmem:[#allocation1 + $0x10] sm:$0xff pattern:$0x75316420] }
 0x109   : > { %599 = vrot.lane.b32.xlu0 %v592_v39, %s1162_s6  ;;  %597 = vrot.lane.b32.xlu2 %v591_v40, %s1162_s6  ;;  %614 = vst [vmem:[#allocation1 + $0x11] ss:$2 sm:$0xff] %v546_v29  ;;  %v666_v41 = vld.sshfl [vmem:[#allocation1] sm:$0xff pattern:$0x75316420] }
 0x10a   : > { %v667_v42 = vld.sshfl [vmem:[#allocation1 + $0x8] sm:$0xff pattern:$0x75316420] }
 0x10b   : > { %688 = vst [vmem:[#allocation1] ss:$2 sm:$0xff] %v545_v20 }
 0x110   : > { %v617_v44 = vld.sshfl [vmem:[#allocation1 + $0x10] sm:$0xff pattern:$0x75316420]  ;;  %v618_v45 = vld.sshfl [vmem:[#allocation1 + $0x18] sm:$0xff pattern:$0x75316420] }
 0x111   : > { %646 = vrot.lane.b32.xlu0 %v641_v35, %s1153_s19  ;;  %644 = vrot.lane.b32.xlu2 %v640_v37, %s1153_s19  ;;  %639 = vst [vmem:[#allocation1 + $0x10] ss:$2 sm:$0xff] %v546_v29 }
 0x112   : > { %623 = vrot.lane.b32.xlu1 %v617_v44, %s1163_s23  ;;  %v692_v46 = vld.sshfl [vmem:[#allocation1 + $0x8] sm:$0xff pattern:$0x75316420]  ;;  %v691_v47 = vld.sshfl [vmem:[#allocation1] sm:$0xff pattern:$0x75316420] }
 0x113   : > { %714 = vst [vmem:[#allocation1 + $0x1] ss:$2 sm:$0xff] %v545_v20  ;;  %v1167_v44 = vmov 0  }
 0x114   : > { %1044 = vset.pattern.permute.xlu0 %v1167_v44 }
 0x118   : > { %v643_v48 = vld.sshfl [vmem:[#allocation1 + $0x18] sm:$0xff pattern:$0x75316420]  ;;  %v642_v49 = vld.sshfl [vmem:[#allocation1 + $0x10] sm:$0xff pattern:$0x75316420] }
 0x119   : > { %625 = vrot.lane.b32.xlu2 %v618_v45, %s1163_s23  ;;  %665 = vst [vmem:[#allocation1 + $0x11] ss:$2 sm:$0xff] %v546_v29 }
 0x11a   : > { %670 = vrot.lane.b32.xlu1 %v666_v41, %s1164_s5  ;;  %v717_v50 = vld.sshfl [vmem:[#allocation1] sm:$0xff pattern:$0x75316420]  ;;  %v718_v0 = vld.sshfl [vmem:[#allocation1 + $0x8] sm:$0xff pattern:$0x75316420] }
 0x11b   : > { %739 = vst [vmem:[#allocation1] ss:$2 sm:$0xff] %v545_v20 }
 0x120   : > { %v668_v51 = vld.sshfl [vmem:[#allocation1 + $0x10] sm:$0xff pattern:$0x75316420]  ;;  %v669_v25 = vld.sshfl [vmem:[#allocation1 + $0x18] sm:$0xff pattern:$0x75316420] }
 0x121   : > { %672 = vrot.lane.b32.xlu2 %v667_v42, %s1164_s5  ;;  %674 = vrot.lane.b32.xlu0 %v668_v51, %s1164_s5  ;;  %690 = vst [vmem:[#allocation1 + $0x10] ss:$2 sm:$0xff] %v546_v29  ;;  %v780_v42 = vld [vmem:[%s1595_s2] sm:$0xff] }
 0x122   : > { %648 = vrot.lane.b32.xlu1 %v642_v49, %s1153_s19  ;;  %v742_v54 = vld.sshfl [vmem:[#allocation1] sm:$0xff pattern:$0x75316420]  ;;  %v743_v30 = vld.sshfl [vmem:[#allocation1 + $0x8] sm:$0xff pattern:$0x75316420] }
 0x128   : > { %v693_v1 = vld.sshfl [vmem:[#allocation1 + $0x10] sm:$0xff pattern:$0x75316420]  ;;  %v694_v36 = vld.sshfl [vmem:[#allocation1 + $0x18] sm:$0xff pattern:$0x75316420] }
 0x129   : > { %650 = vrot.lane.b32.xlu2 %v643_v48, %s1153_s19  ;;  %721 = vrot.lane.b32.xlu0 %v717_v50, %s1152_s17  ;;  %716 = vst [vmem:[#allocation1 + $0x11] ss:$2 sm:$0xff] %v546_v29  ;;  %s971_s19 = smul.u32 24, %s1274_s29 }
 0x12a   : > { %695 = vrot.lane.b32.xlu1 %v691_v47, %s1165_s7 }
 0x12b   : > { %s190_s28 = scalar_lea.vmem [#allocation7], %s971_s19 }
 0x12c   : > { %s880_s30 = sshll.u32 %s190_s28, 4  ;;  %s881_s30 = int_to_ptr.vmem [resolvable:$true] %s880_s30 }
 0x130   : > { %v719_v52 = vld.sshfl [vmem:[#allocation1 + $0x10] sm:$0xff pattern:$0x75316420]  ;;  %v720_v53 = vld.sshfl [vmem:[#allocation1 + $0x18] sm:$0xff pattern:$0x75316420] }
 0x131   : > { %697 = vrot.lane.b32.xlu2 %v692_v46, %s1165_s7  ;;  %699 = vrot.lane.b32.xlu0 %v693_v1, %s1165_s7  ;;  %741 = vst [vmem:[#allocation1 + $0x10] ss:$2 sm:$0xff] %v546_v29 }
 0x132   : > { %676 = vrot.lane.b32.xlu1 %v669_v25, %s1164_s5 }
 0x138   : > { %v745_v55 = vld.sshfl [vmem:[#allocation1 + $0x18] sm:$0xff pattern:$0x75316420]  ;;  %v744_v43 = vld.sshfl [vmem:[#allocation1 + $0x10] sm:$0xff pattern:$0x75316420] }
 0x139   : > { %746 = vrot.lane.b32.xlu0 %v742_v54, %s1166_s8  ;;  %725 = vrot.lane.b32.xlu2 %v719_v52, %s1152_s17 }
 0x13a   : > { %723 = vrot.lane.b32.xlu1 %v718_v0, %s1152_s17 }
 0x141   : > { %727 = vrot.lane.b32.xlu0 %v720_v53, %s1152_s17  ;;  %752 = vrot.lane.b32.xlu2 %v745_v55, %s1166_s8 }
 0x142   : > { %701 = vrot.lane.b32.xlu1 %v694_v36, %s1165_s7 }
 0x149   : > { %593 = vrot.lane.b32.xlu0 %v1491_v27, %s1162_s6  ;;  %619 = vrot.lane.b32.xlu2 %v1495_v31, %s1163_s23 }
 0x14a   : > { %748 = vrot.lane.b32.xlu1 %v743_v30, %s1166_s8 }
 0x151   : > { %621 = vrot.lane.b32.xlu0 %v1497_v33, %s1163_s23  ;;  %571 = vrot.lane.b32.xlu2 %v1489_v26, %s1154_s20 }
 0x152   : > { %750 = vrot.lane.b32.xlu1 %v744_v43, %s1166_s8  ;;  %s1095_s8 = scalar_lea.hbm %s1596_s3, 48 }
 0x159   : > { %783 = vperm.xlu0 %1044, %v780_v42  }
 0x15a   : > { %595 = vrot.lane.b32.xlu1 %v1493_v28, %s1162_s6 }
 0x15b   : > { %v574_v56 = vpop.permute.xlu2 %573 }
 0x162   : > { %569 = vrot.lane.b32.xlu1 %v1487_v24, %s1154_s20  ;;  %s972_s20 = smul.u32 24, %s1209_s16  ;;  %s867_s16 = scalar_lea.sflag [#allocation6], %s1274_s29 }
 0x163   : > { %v1525_v2 = vpop.permute.xlu2 %597 }
 0x164   : > { %s878_s26 = scalar_lea.hbm %s1596_s3, %s972_s20 }
 0x165   : > { %s882_s4 = sshll.u32 %s878_s26, 4  ;;  %s883_s4 = int_to_ptr.hbm [resolvable:$true] %s882_s4 }
 0x166   : > { %s1089_s6 = sshra.s32 %s883_s4, 4  ;;  %s1090_s6 = int_to_ptr.hbm [resolvable:$true] %s1089_s6 }
 0x167   : > { %s1091_s23 = scalar_lea.hbm %s1090_s6, 24  ;;  %p1096_p0 = scmp.lt.s32.totalorder %s1090_s6, %s1596_s3 }
 0x168   : > { %p1092_p6 = scmp.ne.s32.totalorder %s1090_s6, %s1091_s23  ;;  %p1097_p1 = scmp.lt.s32.totalorder %s1095_s8, %s1091_s23 }
 0x16a   : > { %p1093_p9 = pnand %p1092_p6, %p1238_p11  ;;  %p1098_p3 = por %p1097_p1, %p1096_p0 }
 0x16b   : > { %v645_v57 = vpop.permute.xlu2 %644 }
 0x16c   : > { %p1094_p13 = pneg %p1093_p9 }
 0x16e   : > { %p1099_p4 = pnand %p1098_p3, %p1094_p13 }
 0x173   : > { %v576_v3 = vpop.permute.xlu0 %575  ;;  %v626_v58 = vpop.permute.xlu2 %625 }
 0x174   : > { %v579_v59 = vsel %vm343_vm11, %v574_v56, %v576_v3 }
 0x175   : > { %585 = vst [vmem:[#allocation3 + $0x58] sm:$0xf0] %v579_v59 }
 0x17b   : > { %v600_v60 = vpop.permute.xlu0 %599  ;;  %v673_v61 = vpop.permute.xlu2 %672 }
 0x17c   : > { %v604_v62 = vsel %vm601_vm13, %v1525_v2, %v600_v60  ;;  %v764_v60 = vld [vmem:[%s1594_s1] sm:$0xff] }
 0x17d   : > { %610 = vst [vmem:[#allocation3 + $0x68] sm:$0xf] %v604_v62 }
 0x183   : > { %v647_v63 = vpop.permute.xlu0 %646  ;;  %v651_v4 = vpop.permute.xlu2 %650 }
 0x184   : > { %v653_v5 = vsel %vm652_vm14, %v645_v57, %v647_v63  ;;  %v624_v6 = vpop.permute.xlu1 %623 }
 0x185   : > { %659 = vst [vmem:[#allocation3 + $0x8] sm:$0xf] %v653_v5  ;;  %v630_v7 = vsel %vm627_vm15, %v624_v6, %v626_v58 }
 0x186   : > { %636 = vst [vmem:[#allocation3 + $0x68] sm:$0xf0] %v630_v7 }
 0x18b   : > { %v698_v8 = vpop.permute.xlu2 %697 }
 0x18c   : > { %v671_v9 = vpop.permute.xlu1 %670 }
 0x18d   : > { %v679_v10 = vsel %vm678_vm0, %v671_v9, %v673_v61  ;;  %v770_v3 = vld [vmem:[#allocation3 + $0x68] sm:$0xff] }
 0x18e   : > { %685 = vst [vmem:[#allocation3 + $0x8] sm:$0xf0] %v679_v10 }
 0x193   : > { %v675_v11 = vpop.permute.xlu0 %674  ;;  %v726_v12 = vpop.permute.xlu2 %725 }
 0x194   : > { %v649_v13 = vpop.permute.xlu1 %648  ;;  %v680_v14 = vsel %vm678_vm0, %v673_v61, %v675_v11  ;;  %v767_v61 = vld [vmem:[#allocation3 + $0x58] sm:$0xff] }
 0x195   : > { %v654_v15 = vsel %vm652_vm14, %v647_v63, %v649_v13  ;;  %v655_v16 = vsel %vm652_vm14, %v649_v13, %v651_v4  ;;  %686 = vst [vmem:[#allocation3 + $0x48] sm:$0xf0] %v680_v14  ;;  %v771_v25 = vld [vmem:[#allocation3 + $0x8] sm:$0xff] }
 0x196   : > { %660 = vst [vmem:[#allocation3 + $0x48] sm:$0xf] %v654_v15 }
 0x197   : > { %661 = vst [vmem:[#allocation3 + $0x40] sm:$0xf] %v655_v16 }
 0x19b   : > { %v722_v17 = vpop.permute.xlu0 %721  ;;  %v753_v18 = vpop.permute.xlu2 %752 }
 0x19c   : > { %v696_v19 = vpop.permute.xlu1 %695 }
 0x19d   : > { %v704_v20 = vsel %vm703_vm1, %v696_v19, %v698_v8  ;;  %v772_v43 = vld [vmem:[#allocation3 + $0x48] sm:$0xff] }
 0x19e   : > { %710 = vst [vmem:[#allocation3 + $0x20] sm:$0xf] %v704_v20 }
 0x1a3   : > { %v700_v21 = vpop.permute.xlu0 %699  ;;  %v620_v22 = vpop.permute.xlu2 %619 }
 0x1a4   : > { %v677_v23 = vpop.permute.xlu1 %676  ;;  %v705_v24 = vsel %vm703_vm1, %v698_v8, %v700_v21 }
 0x1a5   : > { %v681_v26 = vsel %vm678_vm0, %v675_v11, %v677_v23  ;;  %711 = vst [vmem:[#allocation3 + $0x10] sm:$0xf] %v705_v24 }
 0x1a6   : > { %687 = vst [vmem:[#allocation3 + $0x40] sm:$0xf0] %v681_v26 }
 0x1ab   : > { %v747_v27 = vpop.permute.xlu0 %746  ;;  %v572_v28 = vpop.permute.xlu2 %571 }
 0x1ac   : > { %v724_v29 = vpop.permute.xlu1 %723  ;;  %v578_v31 = vsel %vm343_vm11, %v572_v28, %v574_v56 }
 0x1ad   : > { %v730_v33 = vsel %vm729_vm2, %v722_v17, %v724_v29  ;;  %v731_v34 = vsel %vm729_vm2, %v724_v29, %v726_v12  ;;  %584 = vst [vmem:[#allocation3] sm:$0xf0] %v578_v31  ;;  %v773_v56 = vld [vmem:[#allocation3 + $0x40] sm:$0xff] }
 0x1ae   : > { %736 = vst [vmem:[#allocation3 + $0x20] sm:$0xf0] %v730_v33 }
 0x1af   : > { %737 = vst [vmem:[#allocation3 + $0x10] sm:$0xf0] %v731_v34 }
 0x1b3   : > { %v728_v35 = vpop.permute.xlu0 %727 }
 0x1b4   : > { %v702_v37 = vpop.permute.xlu1 %701  ;;  %v732_v38 = vsel %vm729_vm2, %v726_v12, %v728_v35  ;;  %v766_v62 = vld [vmem:[#allocation3] sm:$0xff] }
 0x1b5   : > { %v706_v32 = vsel %vm703_vm1, %v700_v21, %v702_v37  ;;  %738 = vst [vmem:[#allocation3 + $0x38] sm:$0xf0] %v732_v38  ;;  %v774_v51 = vld [vmem:[#allocation3 + $0x20] sm:$0xff] }
 0x1b6   : > { %712 = vst [vmem:[#allocation3 + $0x38] sm:$0xf] %v706_v32  ;;  %v775_v55 = vld [vmem:[#allocation3 + $0x10] sm:$0xff] }
 0x1bb   : > { %v594_v39 = vpop.permute.xlu0 %593 }
 0x1bc   : > { %v749_v40 = vpop.permute.xlu1 %748 }
 0x1bd   : > { %v755_v41 = vsel %vm754_vm3, %v747_v27, %v749_v40  ;;  %v776_v30 = vld [vmem:[#allocation3 + $0x38] sm:$0xff] }
 0x1be   : > { %761 = vst [vmem:[#allocation3 + $0x60] sm:$0xf] %v755_v41 }
 0x1c3   : > { %v622_v45 = vpop.permute.xlu0 %621 }
 0x1c4   : > { %v628_v46 = vsel %vm627_vm15, %v620_v22, %v622_v45  ;;  %v629_v47 = vsel %vm627_vm15, %v622_v45, %v624_v6  ;;  %v751_v48 = vpop.permute.xlu1 %750 }
 0x1c5   : > { %634 = vst [vmem:[#allocation3 + $0x18] sm:$0xf0] %v628_v46  ;;  %v756_v49 = vsel %vm754_vm3, %v749_v40, %v751_v48  ;;  %v757_v50 = vsel %vm754_vm3, %v751_v48, %v753_v18  ;;  %v777_v0 = vld [vmem:[#allocation3 + $0x60] sm:$0xf] }
 0x1c6   : > { %635 = vst [vmem:[#allocation3 + $0x50] sm:$0xf0] %v629_v47  ;;  %961 = vmatpush.msk.msra.mxu0 %vm790_vm4, %v777_v0 }
 0x1c7   : > { %762 = vst [vmem:[#allocation3 + $0x70] sm:$0xf] %v756_v49 }
 0x1c8   : > { %763 = vst [vmem:[#allocation3 + $0x28] sm:$0xf] %v757_v50  ;;  %812 = vmatpush.msra.mxu0 %v774_v51 }
 0x1ca   : > { %813 = vmatpush.msra.mxu0 %v771_v25 }
 0x1cb   : > { %v784_v4 = vpop.permute.xlu0 %783 }
 0x1cc   : > { %v596_v1 = vpop.permute.xlu1 %595 }
 0x1cd   : > { %v602_v36 = vsel %vm601_vm13, %v594_v39, %v596_v1  ;;  %v603_v52 = vsel %vm601_vm13, %v596_v1, %v1525_v2 }
 0x1ce   : > { %608 = vst [vmem:[#allocation3 + $0x18] sm:$0xf] %v602_v36  ;;  %v778_v53 = vld [vmem:[#allocation3 + $0x70] sm:$0xf] }
 0x1cf   : > { %609 = vst [vmem:[#allocation3 + $0x50] sm:$0xf] %v603_v52  ;;  %963 = vmatpush.msk.msra.mxu1 %vm790_vm4, %v778_v53  ;;  %v779_v54 = vld [vmem:[#allocation3 + $0x28] sm:$0xf] }
 0x1d0   : > { %965 = vmatpush.msk.msra.mxu2 %vm790_vm4, %v779_v54 }
 0x1d1   : > { %832 = vmatpush.msra.mxu1 %v775_v55 }
 0x1d2   : > { %852 = vmatpush.msra.mxu2 %v776_v30 }
 0x1d3   : > { %833 = vmatpush.msra.mxu1 %v772_v43 }
 0x1d4   : > { %853 = vmatpush.msra.mxu2 %v773_v56  ;;  %v570_v57 = vpop.permute.xlu1 %569 }
 0x1d5   : > { %v577_v2 = vsel %vm343_vm11, %v570_v57, %v572_v28  ;;  %v768_v58 = vld [vmem:[#allocation3 + $0x18] sm:$0xff] }
 0x1d6   : > { %854 = vmatpush.msra.mxu2 %v770_v3  ;;  %583 = vst [vmem:[#allocation3 + $0x30] sm:$0xf0] %v577_v2  ;;  %814 = vmatpush.msra.mxu0 %v768_v58  ;;  %v769_v59 = vld [vmem:[#allocation3 + $0x50] sm:$0xff] }
 0x1d7   : > { %834 = vmatpush.msra.mxu1 %v769_v59 }
 0x1d8   : > { %855 = vmatpush.msra.mxu2 %v767_v61 }
 0x1d9   : > { %835 = vmatpush.msra.mxu1 %v766_v62  ;;  %966 = vmatmul.msk.f32.vlgmr.msra.gmra.mxu2 %vm786_vm5, %v764_v60 }
 0x1da   : > { %964 = vmatmul.msk.f32.vlgmr.msra.gmra.mxu1 %vm786_vm5, %v764_v60 }
 0x1dd   : > { %v765_v63 = vld [vmem:[#allocation3 + $0x30] sm:$0xff] }
 0x1de   : > { %815 = vmatpush.msra.mxu0 %v765_v63 }
 0x1df   : > { %962 = vmatmul.msk.f32.vlgmr.msra.gmra.mxu0 %vm786_vm5, %v764_v60 }
 0x257   : > { %v837_v5 = vpop.f32.mrf.mxu1 }
 0x258   : > { %v838_v6 = vadd.f32 %v837_v5, %v784_v4 }
 0x25a   : > { %v861_v7 = vmax.f32 %v838_v6, 0.0 }
 0x25c   : > { %v817_v8 = vpop.f32.mrf.mxu0  ;;  %864 = vst [vmem:[%s190_s28 + $0x8] sm:$0xff] %v861_v7  ;;  %v857_v9 = vpop.f32.mrf.mxu2 }
 0x25d   : > { %v818_v10 = vadd.f32 %v817_v8, %v784_v4  ;;  %v858_v11 = vadd.f32 %v857_v9, %v784_v4 }
 0x25f   : > { %v860_v12 = vmax.f32 %v818_v10, 0.0  ;;  %v862_v13 = vmax.f32 %v858_v11, 0.0 }
 0x261   : > { %863 = vst [vmem:[%s190_s28] sm:$0xff] %v860_v12 }
 0x262   : > { %865 = vst [vmem:[%s190_s28 + $0x10] sm:$0xff] %v862_v13 }
 0x263   : > { %1102 = shalt.err (!%p1099_p4)
}
 0x264   : > { %975 = dma.vmem_to_hbm [thread:$0]  (%p1238_p11), %s881_s30, 384, %s883_s4, %s867_s16  }
 0x265 PF: > { %s894_s29 = sand.u32 1, %s1129_s12   ;;  %p1602_p7 = scmp.ge.s32.totalorder %s1141_s15, 2 }
 0x266   : > { %s895_s11 = scalar_lea.sflag [#allocation6], %s894_s29 }
 0x267   : > { %p982_p5 = pnand %p1602_p7, %p1242_p12 }
 0x269   : > { %p983_p8 = pneg %p982_p5 }
 0x26b   : > { %1124 = dma.done.wait (%p983_p8), %s895_s11, 384  }
 0x26c   : > { %1126 = vsyncadd (%p983_p8), %s895_s11, 4294966912  ;;  %p16_p10 = scmp.ge.s32.totalorder %s1213_s18, 4   ;;  %s1603_s12 = smov %s1133_s13 }
 0x26d   : > { %s1604_s13 = smov %s1137_s14  ;;  %s1605_s14 = smov %s1225_s21 }
 0x26e   : > { %s1606_s15 = smov %s1213_s18  ;;  %18 = sbr.rel (!%p16_p10) target bundleno = 5 (0x5), region = 122 }
 0x273   :  { %901 = vsyncpa [#allocation5], 1 }
 0x274   :  { %903 = vsyncpa [#allocation5 + $0x1], 1 }
 0x275   :  { %904 = vsyncpa [#allocation6], 1 }
 0x276   :  { %906 = vsyncpa [#allocation6 + $0x1], 1 }

</bundles_post_ra>
